<compile_context>
chip_gen: v7x
topology: tpu7x:2x2x1
jax: 0.10.0
libtpu: 0.0.40
codegen_flags: <defaults>
</compile_context>

<pallas_src>
import functools

import jax
import jax.numpy as jnp
from jax import lax
from jax.experimental import pallas as pl
from jax.experimental.pallas import tpu as pltpu


def nn3_kernel(x_ref,
               w1_ref, b1_ref,
               w2_ref, b2_ref,
               w3_ref, b3_ref,
               w4t_ref, b4_ref,
               o_ref):
    """Fused forward pass, feature-major ([features, batch]) layout.

    x_ref  : [in,  bb]    bf16 (or f32)
    w{k}   : [out, in]    (w1 may be bf16, rest f32)  -> layer is W @ h + b
    b{k}   : [out, 1]     f32
    w4t    : [in4, out4]  f32 (pre-transposed so out==1 broadcasts on lanes)
    o_ref  : [out4, bb]   f32
    """
    x = x_ref[...]

    h = jnp.dot(w1_ref[...], x, preferred_element_type=jnp.float32) + b1_ref[...]
    h = jnp.maximum(h, 0.0)

    h = jnp.dot(w2_ref[...], h, preferred_element_type=jnp.float32) + b2_ref[...]
    h = jnp.maximum(h, 0.0)

    h = jnp.dot(w3_ref[...], h, preferred_element_type=jnp.float32) + b3_ref[...]
    h = jnp.maximum(h, 0.0)

    w4t = w4t_ref[...]                      # [h3, out]
    if w4t.shape[1] == 1:
        # N=1 on the MXU is pure padding: VPU multiply + sublane (XLU) reduce.
        out = jnp.sum(w4t * h, axis=0, keepdims=True) + b4_ref[...]
    else:
        out = lax.dot_general(w4t, h, (((0,), (0,)), ((), ())),
                              preferred_element_type=jnp.float32) + b4_ref[...]
    o_ref[...] = out.astype(o_ref.dtype)


@functools.partial(jax.jit, static_argnames=("block_batch", "stream_bf16"))
def nn3_forward(x, params, *, block_batch=1024, stream_bf16=True):
    """x: [B, input_size]; params in PyTorch layout (w*: [out, in], b*: [out])."""
    B, in_size = x.shape
    out_size = params["w4"].shape[0]

    # --- wrapper-side layout plumbing (outside the kernel) ---
    x_t = x.T                                   # [in, B]  (batch on lanes)
    if stream_bf16:
        x_t = x_t.astype(jnp.bfloat16)
        w1 = params["w1"].astype(jnp.bfloat16)  # bf16 x bf16 on MXU, f32 accumulate
    else:
        w1 = params["w1"]
    w2, w3 = params["w2"], params["w3"]
    w4t = params["w4"].T                        # [h3, out]
    b1 = params["b1"].reshape(-1, 1)
    b2 = params["b2"].reshape(-1, 1)
    b3 = params["b3"].reshape(-1, 1)
    b4 = params["b4"].reshape(-1, 1)

    # Batch tile: as large as possible and lane-dense (multiple of 128),
    # unless the whole batch fits in one tile (block == full dim is allowed).
    bb = min(block_batch, B)
    if bb < B and bb % 128 != 0:
        bb = max(128, (bb // 128) * 128)
    grid = (pl.cdiv(B, bb),)

    def resident(a):
        # Constant index_map => block stays resident in VMEM, no re-DMA per tile.
        return pl.BlockSpec(a.shape, lambda i: (0, 0))

    in_specs = [
        pl.BlockSpec((in_size, bb), lambda i: (0, i)),
        resident(w1), resident(b1),
        resident(w2), resident(b2),
        resident(w3), resident(b3),
        resident(w4t), resident(b4),
    ]
    out_specs = pl.BlockSpec((out_size, bb), lambda i: (0, i))

    h1, h2, h3 = w1.shape[0], w2.shape[0], w3.shape[0]
    flops = 2 * B * (in_size * h1 + h1 * h2 + h2 * h3 + h3 * out_size)
    bytes_accessed = (
        B * in_size * (2 if stream_bf16 else 4)      # x stream (dominant term)
        + B * out_size * 4                           # output
        + sum(int(a.size) * a.dtype.itemsize
              for a in (w1, b1, w2, b2, w3, b3, w4t, b4)))

    out_t = pl.pallas_call(
        nn3_kernel,
        out_shape=jax.ShapeDtypeStruct((out_size, B), jnp.float32),
        grid_spec=pltpu.PrefetchScalarGridSpec(
            num_scalar_prefetch=0,
            grid=grid,
            in_specs=in_specs,
            out_specs=out_specs,
        ),
        compiler_params=pltpu.CompilerParams(
            dimension_semantics=("parallel",),
            vmem_limit_bytes=32 * 1024 * 1024,
        ),
        cost_estimate=pl.CostEstimate(
            flops=flops, transcendentals=0, bytes_accessed=bytes_accessed),
    )(x_t, w1, b1, w2, b2, w3, b3, w4t, b4)

    return out_t.T                                   # [B, out_size]


def init_params(key, input_size, hidden1=32, hidden2=16, hidden3=8, output=1):
    """nn.Linear-style init; weights [out, in], biases [out] (PyTorch layout)."""
    sizes = [(hidden1, input_size), (hidden2, hidden1),
             (hidden3, hidden2), (output, hidden3)]
    params = {}
    for idx, (fan_out, fan_in) in enumerate(sizes, start=1):
        key, kw, kb = jax.random.split(key, 3)
        bound = 1.0 / float(fan_in) ** 0.5
        params[f"w{idx}"] = jax.random.uniform(
            kw, (fan_out, fan_in), jnp.float32, -bound, bound)
        params[f"b{idx}"] = jax.random.uniform(
            kb, (fan_out,), jnp.float32, -bound, bound)
    return params


def nn3_reference(x, params, stream_bf16=True):
    """Pure-JAX reference matching the kernel's input rounding."""
    w1 = params["w1"]
    if stream_bf16:
        x = x.astype(jnp.bfloat16).astype(jnp.float32)
        w1 = w1.astype(jnp.bfloat16).astype(jnp.float32)
    h = jnp.maximum(x @ w1.T + params["b1"], 0.0)
    h = jnp.maximum(h @ params["w2"].T + params["b2"], 0.0)
    h = jnp.maximum(h @ params["w3"].T + params["b3"], 0.0)
    return h @ params["w4"].T + params["b4"]


if __name__ == "__main__":
    key = jax.random.PRNGKey(0)
    k_x, k_p, k_x2 = jax.random.split(key, 3)

    input_size = 16
    params = init_params(k_p, input_size)

    # Main check: two lane-dense tiles (grid length 2 -> both v7x TensorCores).
    B = 1024
    x = jax.random.normal(k_x, (B, input_size), jnp.float32)
    out = jax.block_until_ready(nn3_forward(x, params, block_batch=512))
    ref = nn3_reference(x, params)
    assert out.shape == (B, 1), out.shape
    assert jnp.allclose(out, ref, atol=1e-4, rtol=1e-4), (
        float(jnp.max(jnp.abs(out - ref))))

    # Ragged batch (not a multiple of the tile): Pallas pads the last input
    # block and clips the out-of-bounds output columns.
    B2 = 300
    x2 = jax.random.normal(k_x2, (B2, input_size), jnp.float32)
    out2 = jax.block_until_ready(nn3_forward(x2, params, block_batch=128))
    ref2 = nn3_reference(x2, params)
    assert out2.shape == (B2, 1), out2.shape
    assert jnp.allclose(out2, ref2, atol=1e-4, rtol=1e-4), (
        float(jnp.max(jnp.abs(out2 - ref2))))

    print("KERNEL_OK")
</pallas_src>

<mosaic_0001>
module attributes {stable_mosaic.version = 11 : i64} {
  func.func @nn3_kernel(%arg0: i32, %arg1: memref<16x512xbf16, #tpu.memory_space<vmem>>, %arg2: memref<32x16xbf16, #tpu.memory_space<vmem>>, %arg3: memref<32x1xf32, #tpu.memory_space<vmem>>, %arg4: memref<16x32xf32, #tpu.memory_space<vmem>>, %arg5: memref<16x1xf32, #tpu.memory_space<vmem>>, %arg6: memref<8x16xf32, #tpu.memory_space<vmem>>, %arg7: memref<8x1xf32, #tpu.memory_space<vmem>>, %arg8: memref<8x1xf32, #tpu.memory_space<vmem>>, %arg9: memref<1x1xf32, #tpu.memory_space<vmem>>, %arg10: memref<1x512xf32, #tpu.memory_space<vmem>>) attributes {dimension_semantics = [#tpu.dimension_semantics<parallel>], iteration_bounds = array<i64: 2>, scalar_prefetch = 0 : i64, scratch_operands = 0 : i64, tpu.core_type = #tpu.core_type<tc>, window_params = [{transform_indices = @transform_0, window_bounds = array<i64: 16, 512>}, {pipeline_mode = #tpu.pipeline_mode<synchronous>, transform_indices = @transform_1, window_bounds = array<i64: 32, 16>}, {pipeline_mode = #tpu.pipeline_mode<synchronous>, transform_indices = @transform_2, window_bounds = array<i64: 32, 1>}, {pipeline_mode = #tpu.pipeline_mode<synchronous>, transform_indices = @transform_3, window_bounds = array<i64: 16, 32>}, {pipeline_mode = #tpu.pipeline_mode<synchronous>, transform_indices = @transform_4, window_bounds = array<i64: 16, 1>}, {pipeline_mode = #tpu.pipeline_mode<synchronous>, transform_indices = @transform_5, window_bounds = array<i64: 8, 16>}, {pipeline_mode = #tpu.pipeline_mode<synchronous>, transform_indices = @transform_6, window_bounds = array<i64: 8, 1>}, {pipeline_mode = #tpu.pipeline_mode<synchronous>, transform_indices = @transform_7, window_bounds = array<i64: 8, 1>}, {pipeline_mode = #tpu.pipeline_mode<synchronous>, transform_indices = @transform_8, window_bounds = array<i64: 1, 1>}, {transform_indices = @transform_9, window_bounds = array<i64: 1, 512>}]} {
    %c0 = arith.constant 0 : index
    %c0_0 = arith.constant 0 : index
    %0 = vector.load %arg1[%c0, %c0_0] : memref<16x512xbf16, #tpu.memory_space<vmem>>, vector<16x512xbf16>
    %c0_1 = arith.constant 0 : index
    %c0_2 = arith.constant 0 : index
    %1 = vector.load %arg2[%c0_1, %c0_2] : memref<32x16xbf16, #tpu.memory_space<vmem>>, vector<32x16xbf16>
    %cst = arith.constant dense<0.000000e+00> : vector<32x512xf32>
    %2 = tpu.matmul %1, %0, %cst {dimension_numbers = #tpu.dot_dimension_numbers<[1], [0], [0], [1], [0, 0, 1, 1], [], []>} : vector<32x16xbf16>, vector<16x512xbf16>, vector<32x512xf32> -> vector<32x512xf32>
    %c0_3 = arith.constant 0 : index
    %c0_4 = arith.constant 0 : index
    %3 = vector.load %arg3[%c0_3, %c0_4] : memref<32x1xf32, #tpu.memory_space<vmem>>, vector<32x1xf32>
    %4 = vector.broadcast %3 : vector<32x1xf32> to vector<32x512xf32>
    %5 = arith.addf %2, %4 : vector<32x512xf32>
    %cst_5 = arith.constant 0.000000e+00 : f32
    %6 = vector.broadcast %cst_5 : f32 to vector<32x512xf32>
    %7 = arith.maximumf %5, %6 : vector<32x512xf32>
    %c0_6 = arith.constant 0 : index
    %c0_7 = arith.constant 0 : index
    %8 = vector.load %arg4[%c0_6, %c0_7] : memref<16x32xf32, #tpu.memory_space<vmem>>, vector<16x32xf32>
    %cst_8 = arith.constant dense<0.000000e+00> : vector<16x512xf32>
    %9 = tpu.matmul %8, %7, %cst_8 {dimension_numbers = #tpu.dot_dimension_numbers<[1], [0], [0], [1], [0, 0, 1, 1], [], []>} : vector<16x32xf32>, vector<32x512xf32>, vector<16x512xf32> -> vector<16x512xf32>
    %c0_9 = arith.constant 0 : index
    %c0_10 = arith.constant 0 : index
    %10 = vector.load %arg5[%c0_9, %c0_10] : memref<16x1xf32, #tpu.memory_space<vmem>>, vector<16x1xf32>
    %11 = vector.broadcast %10 : vector<16x1xf32> to vector<16x512xf32>
    %12 = arith.addf %9, %11 : vector<16x512xf32>
    %cst_11 = arith.constant 0.000000e+00 : f32
    %13 = vector.broadcast %cst_11 : f32 to vector<16x512xf32>
    %14 = arith.maximumf %12, %13 : vector<16x512xf32>
    %c0_12 = arith.constant 0 : index
    %c0_13 = arith.constant 0 : index
    %15 = vector.load %arg6[%c0_12, %c0_13] : memref<8x16xf32, #tpu.memory_space<vmem>>, vector<8x16xf32>
    %cst_14 = arith.constant dense<0.000000e+00> : vector<8x512xf32>
    %16 = tpu.matmul %15, %14, %cst_14 {dimension_numbers = #tpu.dot_dimension_numbers<[1], [0], [0], [1], [0, 0, 1, 1], [], []>} : vector<8x16xf32>, vector<16x512xf32>, vector<8x512xf32> -> vector<8x512xf32>
    %c0_15 = arith.constant 0 : index
    %c0_16 = arith.constant 0 : index
    %17 = vector.load %arg7[%c0_15, %c0_16] : memref<8x1xf32, #tpu.memory_space<vmem>>, vector<8x1xf32>
    %18 = vector.broadcast %17 : vector<8x1xf32> to vector<8x512xf32>
    %19 = arith.addf %16, %18 : vector<8x512xf32>
    %cst_17 = arith.constant 0.000000e+00 : f32
    %20 = vector.broadcast %cst_17 : f32 to vector<8x512xf32>
    %21 = arith.maximumf %19, %20 : vector<8x512xf32>
    %c0_18 = arith.constant 0 : index
    %c0_19 = arith.constant 0 : index
    %22 = vector.load %arg8[%c0_18, %c0_19] : memref<8x1xf32, #tpu.memory_space<vmem>>, vector<8x1xf32>
    %23 = vector.broadcast %22 : vector<8x1xf32> to vector<8x512xf32>
    %24 = arith.mulf %23, %21 : vector<8x512xf32>
    %cst_20 = arith.constant dense<0.000000e+00> : vector<512xf32>
    %25 = vector.multi_reduction <add>, %24, %cst_20 [0] : vector<8x512xf32> to vector<512xf32>
    %26 = vector.shape_cast %25 : vector<512xf32> to vector<1x512xf32>
    %c0_21 = arith.constant 0 : index
    %c0_22 = arith.constant 0 : index
    %27 = vector.load %arg9[%c0_21, %c0_22] : memref<1x1xf32, #tpu.memory_space<vmem>>, vector<1x1xf32>
    %28 = vector.broadcast %27 : vector<1x1xf32> to vector<1x512xf32>
    %29 = arith.addf %26, %28 : vector<1x512xf32>
    %c0_23 = arith.constant 0 : index
    %c0_24 = arith.constant 0 : index
    %30 = vector.load %arg10[%c0_23, %c0_24] : memref<1x512xf32, #tpu.memory_space<vmem>>, vector<1x512xf32>
    tpu.vector_store %arg10[%c0_23, %c0_24], %29 {strides = array<i32>} : memref<1x512xf32, #tpu.memory_space<vmem>>, vector<1x512xf32>,
    return
  }
  func.func @transform_0(%arg0: i32) -> (i32, i32) {
    %c0_i32 = arith.constant 0 : i32
    %c0_i32_0 = arith.constant 0 : i32
    return %c0_i32, %arg0 : i32, i32
  }
  func.func @transform_1(%arg0: i32) -> (i32, i32) {
    %c0_i32 = arith.constant 0 : i32
    %c0_i32_0 = arith.constant 0 : i32
    %c0_i32_1 = arith.constant 0 : i32
    return %c0_i32, %c0_i32_0 : i32, i32
  }
  func.func @transform_2(%arg0: i32) -> (i32, i32) {
    %c0_i32 = arith.constant 0 : i32
    %c0_i32_0 = arith.constant 0 : i32
    %c0_i32_1 = arith.constant 0 : i32
    return %c0_i32, %c0_i32_0 : i32, i32
  }
  func.func @transform_3(%arg0: i32) -> (i32, i32) {
    %c0_i32 = arith.constant 0 : i32
    %c0_i32_0 = arith.constant 0 : i32
    %c0_i32_1 = arith.constant 0 : i32
    return %c0_i32, %c0_i32_0 : i32, i32
  }
  func.func @transform_4(%arg0: i32) -> (i32, i32) {
    %c0_i32 = arith.constant 0 : i32
    %c0_i32_0 = arith.constant 0 : i32
    %c0_i32_1 = arith.constant 0 : i32
    return %c0_i32, %c0_i32_0 : i32, i32
  }
  func.func @transform_5(%arg0: i32) -> (i32, i32) {
    %c0_i32 = arith.constant 0 : i32
    %c0_i32_0 = arith.constant 0 : i32
    %c0_i32_1 = arith.constant 0 : i32
    return %c0_i32, %c0_i32_0 : i32, i32
  }
  func.func @transform_6(%arg0: i32) -> (i32, i32) {
    %c0_i32 = arith.constant 0 : i32
    %c0_i32_0 = arith.constant 0 : i32
    %c0_i32_1 = arith.constant 0 : i32
    return %c0_i32, %c0_i32_0 : i32, i32
  }
  func.func @transform_7(%arg0: i32) -> (i32, i32) {
    %c0_i32 = arith.constant 0 : i32
    %c0_i32_0 = arith.constant 0 : i32
    %c0_i32_1 = arith.constant 0 : i32
    return %c0_i32, %c0_i32_0 : i32, i32
  }
  func.func @transform_8(%arg0: i32) -> (i32, i32) {
    %c0_i32 = arith.constant 0 : i32
    %c0_i32_0 = arith.constant 0 : i32
    %c0_i32_1 = arith.constant 0 : i32
    return %c0_i32, %c0_i32_0 : i32, i32
  }
  func.func @transform_9(%arg0: i32) -> (i32, i32) {
    %c0_i32 = arith.constant 0 : i32
    %c0_i32_0 = arith.constant 0 : i32
    return %c0_i32, %arg0 : i32, i32
  }
}

</mosaic_0001>

<bundles_post_ra>
// kernel: nn3_forward.1
= control target key start
LH: loop header
LB: loop body
LE: loop exit
PB: predicated region body
PF: predicated region fallthrough
CT: control target
= control target key end

     0   :  { %s1444_s0 = inlined_call_operand.vmem [shape: bf16[16,1024], index: 0, kind: input, shape index: {}]   ;;  %s1445_s1 = inlined_call_operand.vmem [shape: bf16[32,16], index: 1, kind: input, shape index: {}]   ;;  %s1446_s2 = inlined_call_operand.vmem [shape: f32[32,1], index: 2, kind: input, shape index: {}]   ;;  %s1447_s3 = inlined_call_operand.vmem [shape: f32[16,32], index: 3, kind: input, shape index: {}]   ;;  %s1448_s4 = inlined_call_operand.vmem [shape: f32[16,1], index: 4, kind: input, shape index: {}]   ;;  %s1449_s5 = inlined_call_operand.vmem [shape: f32[8,16], index: 5, kind: input, shape index: {}]   ;;  %s1450_s6 = inlined_call_operand.vmem [shape: f32[8,1], index: 6, kind: input, shape index: {}]   ;;  %s1451_s7 = inlined_call_operand.vmem [shape: f32[8,1], index: 7, kind: input, shape index: {}]   ;;  %s1452_s8 = inlined_call_operand.<no memory space> [shape: f32[1,1], index: 8, kind: input, shape index: {}]   ;;  %s1453_s9 = inlined_call_operand.hbm [shape: f32[1,1024], index: 9, kind: output, shape index: {}]  }
   0x1   :  { %v14_v0 = vstv %s1452_s8 }
   0x2   :  { %15 = vst [vmem:[#allocation2] sm:$0x1] %v14_v0 }
   0x3   :  { %16 = vsyncpa [#allocation5], 0 }
   0x4   :  { %18 = vsyncpa [#allocation5 + $0x1], 0  ;;  %s1283_s11 = smov 0   ;;  %s1285_s12 = smov 0  }
   0x5   :  { %s1287_s13 = smov 0   ;;  %s1289_s14 = smov 0  }
   0x6 LB: > { %s1053_s8 = sadd.s32 4294967295, %s1224_s14   ;;  %s1054_s15 = sadd.s32 4294967294, %s1224_s14   ;;  %s1224_s14 = sphi %s1289_s14, %s1459_s14   ;;  %s1220_s13 = sphi %s1287_s13, %s1458_s13   ;;  %s1216_s12 = sphi %s1285_s12, %s1457_s12   ;;  %s1212_s11 = sphi %s1283_s11, %s1456_s11  }
   0x7   : > { %s1306_s16 = sadd.s32 1, %s1224_s14   ;;  %s31_s17 = sadd.s32 1, %s1220_s13 }
   0x8   : > { %s28_s18 = ssub.s32 %s1224_s14, %s1306_s16  ;;  %p38_p0 = scmp.ne.s32.totalorder %s1220_s13, %s1216_s12 }
   0x9   : > { %p29_p1 = scmp.eq.s32.totalorder %s28_s18, 0  ;;  %p39_p2 = scmp.eq.s32.totalorder %s1224_s14, 0 }
   0xa   : > { %p236_p3 = scmp.eq.s32.totalorder %s1053_s8, 1  ;;  %p241_p4 = scmp.ne.s32.totalorder %s1216_s12, %s1212_s11 }
   0xb   : > { %s1319_s19 = scalar_select %p29_p1, %s1220_s13, %s31_s17  }
   0xc   : > { %p40_p5 = por %p39_p2, %p38_p0  ;;  %p1321_p6 = por %p236_p3, %p38_p0 }
   0xd   : > { %p242_p7 = scmp.eq.s32.totalorder %s1054_s15, 1  ;;  %p1056_p9 = scmp.ge.s32.totalorder %s1224_s14, 2 }
   0xf   : > { %p1325_p8 = por %p242_p7, %p241_p4  ;;  %282 = sbr.rel (%p1056_p9) target bundleno = 29 (0x1d), region = 48 }
  0x16   : > { %285 = sbr.rel (!%p40_p5) target bundleno = 29 (0x1d), region = 52  ;;  %s287_s22 = sand.u32 (%p40_p5), 1, %s1220_s13  }
  0x17   : > { %s1084_s23 = sshll.u32 (%p40_p5), %s1224_s14, 4  ;;  %s1057_s24 = sshll.u32 (%p40_p5), %s287_s22, 5 }
  0x18   : > { %s292_s27 = scalar_lea.vmem (%p40_p5), %s1444_s0, %s1084_s23  ;;  %s289_s28 = scalar_lea.vmem (%p40_p5), [#allocation3], %s1057_s24 }
  0x19   : > { %v305_v1 = vld [vmem:[%s292_s27] sm:$0xff] (%p40_p5)  ;;  %v307_v2 = vld [vmem:[%s292_s27 + $0x8] sm:$0xff] (%p40_p5) }
  0x1a   : > { %v309_v3 = vld [vmem:[%s292_s27 + $0x20] sm:$0xff] (%p40_p5)  ;;  %306 = vst [vmem:[%s289_s28] sm:$0xff] (%p40_p5), %v305_v1  ;;  %308 = vst [vmem:[%s289_s28 + $0x8] sm:$0xff] (%p40_p5), %v307_v2  ;;  %v311_v4 = vld [vmem:[%s292_s27 + $0x28] sm:$0xff] (%p40_p5) }
  0x1b   : > { %310 = vst [vmem:[%s289_s28 + $0x10] sm:$0xff] (%p40_p5), %v309_v3  ;;  %312 = vst [vmem:[%s289_s28 + $0x18] sm:$0xff] (%p40_p5), %v311_v4 }
  0x1d PF: > { %p1060_p10 = scmp.ge.s32.totalorder %s1224_s14, 1  ;;  %p317_p11 = scmp.lt.s32.totalorder %s1224_s14, 3 }
  0x1f   : > { %p318_p12 = pnand %p1060_p10, %p317_p11 }
  0x20   : > { %s1340_s29 = sand.u32 (!%p318_p12), 1, %s1216_s12   ;;  %v1226_v5 = vmov (!%p318_p12), 0   ;;  %v370_v6 = vld [vmem:[%s1446_s2] sm:$0xff] (!%p318_p12)  ;;  %v371_v11 = vld [vmem:[%s1446_s2 + $0x8] sm:$0xff] (!%p318_p12)  ;;  %v372_v13 = vld [vmem:[%s1446_s2 + $0x10] sm:$0xff] (!%p318_p12)  ;;  %vm424_vm0 = vcmask (!%p318_p12), 130048  }
  0x21   : > { %321 = sbr.rel (%p318_p12) target bundleno = 755 (0x2f3), region = 75  ;;  %s1061_s30 = sshll.u32 (!%p318_p12), %s1340_s29, 5  ;;  %463 = vmatprep.mubr.bf16.mxu0 (!%p318_p12), %v1226_v5  ;;  %516 = vmatprep.mubr.bf16.mxu1 (!%p318_p12), %v1226_v5  ;;  %v1160_v12 = vld [vmem:[%s1445_s1] sm:$0xff] (!%p318_p12)   ;;  %v373_v15 = vld [vmem:[%s1446_s2 + $0x18] sm:$0xff] (!%p318_p12)  ;;  %v556_v17 = vld [vmem:[%s1448_s4 + $0x8] sm:$0xff] (!%p318_p12)  ;;  %v1227_v21 = vmov (!%p318_p12), 0.0  }
  0x22   : > { %1152 = vset.pattern.permute.xlu0 (!%p318_p12), %v1226_v5  ;;  %1153 = vset.pattern.permute.xlu1 (!%p318_p12), %v1226_v5  ;;  %s326_s17 = scalar_lea.vmem (!%p318_p12), [#allocation3], %s1061_s30  ;;  %v555_v14 = vld [vmem:[%s1448_s4] sm:$0xff] (!%p318_p12)  ;;  %v1161_v18 = vld [vmem:[%s1445_s1 + $0x8] sm:$0xff] (!%p318_p12)   ;;  %vm567_vm1 = vcmask (!%p318_p12), 261120   ;;  %s1062_s18 = sshll.u32 (!%p318_p12), %s1340_s29, 2 }
  0x23   : > { %v1154_v7 = vld [vmem:[%s326_s17 + $0x4] ss:$16 sps:$4 sm:$0xff] (!%p318_p12)   ;;  %376 = vperm.xlu0 (!%p318_p12), %1152, %v370_v6   ;;  %v1156_v8 = vld [vmem:[%s326_s17 + $0xc] ss:$16 sps:$4 sm:$0xff] (!%p318_p12)   ;;  %v1158_v9 = vld [vmem:[%s326_s17] ss:$16 sps:$4 sm:$0xff] (!%p318_p12)   ;;  %386 = vperm.xlu1 (!%p318_p12), %1153, %v372_v13  }
  0x24   : > { %431 = vmatprep.subr.bf16.mxu0 (!%p318_p12), %v1154_v7  ;;  %v1159_v10 = vld [vmem:[%s326_s17 + $0x8] ss:$16 sps:$4 sm:$0xff] (!%p318_p12)   ;;  %484 = vmatprep.subr.bf16.mxu1 (!%p318_p12), %v1156_v8  ;;  %v737_v16 = vld [vmem:[%s1450_s6] sm:$0xff] (!%p318_p12)  ;;  %s1085_s22 = sshll.u32 (!%p318_p12), %s1053_s8, 6  ;;  %s358_s23 = scalar_lea.vmem (!%p318_p12), [#allocation4], %s1062_s18 }
  0x25   : > { %432 = vmatpush1.bf16.msra.mxu0 (!%p318_p12), %v1158_v9  ;;  %485 = vmatpush1.bf16.msra.mxu1 (!%p318_p12), %v1159_v10  ;;  %v926_v19 = vld [vmem:[#allocation2] sm:$0x1] (!%p318_p12)  ;;  %s989_s24 = sshll.u32 (!%p318_p12), %s358_s23, 4  ;;  %s1400_s27 = scalar_lea.hbm (!%p318_p12), %s1453_s9, %s1085_s22  ;;  %s1402_s24 = int_to_ptr.vmem [resolvable:$true] %s989_s24 }
  0x26   : > { %v892_v20 = vld [vmem:[%s1451_s7] sm:$0xff] (!%p318_p12)  ;;  %s975_s28 = scalar_lea.sflag (!%p318_p12), [#allocation5], %s1340_s29  ;;  %s1162_s30 = scalar_lea.vmem (!%p318_p12), %s1402_s24, 64 }
  0x27   : > { %381 = vperm.xlu0 (!%p318_p12), %1152, %v371_v11   ;;  %391 = vperm.xlu1 (!%p318_p12), %1153, %v373_v15   ;;  %p1163_p13 = scmp.ne.s32.totalorder (!%p318_p12), %s1402_s24, %s1162_s30  ;;  %s1229_s8 = smov (!%p318_p12), [#allocation4]  }
  0x28   : > { %1069 = vmatmul.mubr.msk.bf16.vlgmr.msra.gmra.mrb[0].mxu0 %vm424_vm0, %v1160_v12  ;;  %1071 = vmatmul.mubr.msk.bf16.vlgmr.msra.gmra.mrb[0].mxu1 %vm424_vm0, %v1160_v12  ;;  %s1166_s10 = sshll.u32 %s1229_s8, 4  ;;  %s1167_s10 = int_to_ptr.vmem [resolvable:$false] %s1166_s10 }
  0x29   : > { %473 = vmatprep.mubr.bf16.mxu0 %v1226_v5  ;;  %526 = vmatprep.mubr.bf16.mxu1 %v1226_v5  ;;  %p1164_p0 = pnand %p1163_p13, %p1321_p6  ;;  %s1168_s15 = scalar_lea.vmem %s1167_s10, 128 }
  0x2a   : > { %p1169_p2 = scmp.lt.s32.totalorder %s1402_s24, %s1167_s10  ;;  %p1170_p3 = scmp.lt.s32.totalorder %s1168_s15, %s1162_s30 }
  0x2b   : > { %559 = vperm.xlu0 %1152, %v555_v14   ;;  %564 = vperm.xlu1 %1153, %v556_v17   ;;  %p1165_p1 = pneg %p1164_p0 }
  0x2c   : > { %p1171_p4 = por %p1170_p3, %p1169_p2 }
  0x2e   : > { %p1172_p5 = pnand %p1171_p4, %p1165_p1 }
  0x2f   : > { %740 = vperm.xlu0 %1152, %v737_v16   ;;  %895 = vperm.xlu1 %1153, %v892_v20  }
  0x30   : > { %1070 = vmatmul.mubr.msk.bf16.gmra.mrb[4].mxu0 %vm424_vm0, %v1161_v18  ;;  %1072 = vmatmul.mubr.msk.bf16.gmra.mrb[4].mxu1 %vm424_vm0, %v1161_v18  ;;  %v553_v18 = vld [vmem:[%s1447_s3] sm:$0xff] }
  0x31   : > { %638 = vmatprep.mubr.f32.mxu0 %v1227_v21  ;;  %715 = vmatprep.mubr.f32.mxu1 %v1227_v21 }
  0x33   : > { %929 = vperm.xlu0 %1152, %v926_v19   ;;  %v554_v19 = vld [vmem:[%s1447_s3 + $0x8] sm:$0xff] }
  0xa2   : > { %v377_v22 = vpop.permute.xlu0 %376  ;;  %v387_v24 = vpop.permute.xlu1 %386 }
  0xa6   : > { %v382_v23 = vpop.permute.xlu0 %381  ;;  %v392_v49 = vpop.permute.xlu1 %391 }
  0xfb   : > { %v465_v25 = vpop.f32.mrb[0].mxu0  ;;  %v518_v26 = vpop.f32.mrb[0].mxu1 }
  0xfc   : > { %v466_v27 = vadd.f32 %v465_v25, %v377_v22  ;;  %v519_v28 = vadd.f32 %v518_v26, %v377_v22  ;;  %v467_v29 = vpop.f32.mrb[1].mxu0  ;;  %v520_v30 = vpop.f32.mrb[1].mxu1 }
  0xfd   : > { %v468_v31 = vadd.f32 %v467_v29, %v377_v22  ;;  %v521_v32 = vadd.f32 %v520_v30, %v377_v22  ;;  %v469_v33 = vpop.f32.mrb[2].mxu0  ;;  %v522_v34 = vpop.f32.mrb[2].mxu1 }
  0xfe   : > { %v470_v35 = vadd.f32 %v469_v33, %v382_v23  ;;  %v523_v36 = vadd.f32 %v522_v34, %v382_v23  ;;  %v471_v37 = vpop.f32.mrb[3].mxu0  ;;  %v524_v38 = vpop.f32.mrb[3].mxu1  ;;  %v537_v41 = vmax.f32 %v466_v27, 0.0  ;;  %v539_v42 = vmax.f32 %v519_v28, 0.0 }
  0xff   : > { %v472_v39 = vadd.f32 %v471_v37, %v382_v23  ;;  %v525_v40 = vadd.f32 %v524_v38, %v382_v23  ;;  %v538_v45 = vmax.f32 %v468_v31, 0.0  ;;  %v540_v46 = vmax.f32 %v521_v32, 0.0  ;;  %v560_v25 = vpop.permute.xlu0 %559  ;;  %v565_v26 = vpop.permute.xlu1 %564 }
 0x100   : > { %v541_v43 = vmax.f32 %v470_v35, 0.0  ;;  %v543_v44 = vmax.f32 %v523_v36, 0.0 }
 0x101   : > { %v542_v47 = vmax.f32 %v472_v39, 0.0  ;;  %v544_v48 = vmax.f32 %v525_v40, 0.0 }
 0x102   : > { %v1088_v50 = vpack.c.bf16 %v541_v43, %v537_v41  ;;  %v1096_v51 = vpack.c.bf16 %v543_v44, %v539_v42 }
 0x103   : > { %v1086_v52 = vpack.c.bf16 %v542_v47, %v538_v45  ;;  %v1094_v53 = vpack.c.bf16 %v544_v48, %v540_v46  ;;  %v475_v54 = vpop.f32.mrb[4].mxu0  ;;  %v528_v55 = vpop.f32.mrb[4].mxu1 }
 0x104   : > { %v476_v56 = vadd.f32 %v475_v54, %v387_v24  ;;  %v529_v57 = vadd.f32 %v528_v55, %v387_v24  ;;  %v477_v58 = vpop.f32.mrb[5].mxu0  ;;  %v530_v59 = vpop.f32.mrb[5].mxu1 }
 0x105   : > { %v478_v60 = vadd.f32 %v477_v58, %v387_v24  ;;  %v531_v61 = vadd.f32 %v530_v59, %v387_v24  ;;  %v479_v62 = vpop.f32.mrb[6].mxu0  ;;  %v532_v63 = vpop.f32.mrb[6].mxu1  ;;  %1087 = vmatprep.subr.bf16.mxu0 %v1086_v52  ;;  %1095 = vmatprep.subr.bf16.mxu1 %v1094_v53 }
 0x106   : > { %v480_v0 = vadd.f32 %v479_v62, %v392_v49  ;;  %v533_v1 = vadd.f32 %v532_v63, %v392_v49  ;;  %v481_v2 = vpop.f32.mrb[7].mxu0  ;;  %v534_v3 = vpop.f32.mrb[7].mxu1  ;;  %1089 = vmatpush1.bf16.msra.mxu0 %v1088_v50  ;;  %1097 = vmatpush1.bf16.msra.mxu1 %v1096_v51  ;;  %v545_v6 = vmax.f32 %v476_v56, 0.0  ;;  %v547_v7 = vmax.f32 %v529_v57, 0.0  ;;  %v736_v50 = vld [vmem:[%s1449_s5] sm:$0xff] }
 0x107   : > { %v482_v4 = vadd.f32 %v481_v2, %v392_v49  ;;  %v535_v5 = vadd.f32 %v534_v3, %v392_v49  ;;  %v546_v10 = vmax.f32 %v478_v60, 0.0  ;;  %v548_v11 = vmax.f32 %v531_v61, 0.0  ;;  %v741_v51 = vpop.permute.xlu0 %740  ;;  %v896_v62 = vpop.permute.xlu1 %895 }
 0x108   : > { %v549_v8 = vmax.f32 %v480_v0, 0.0  ;;  %v551_v9 = vmax.f32 %v533_v1, 0.0  ;;  %v932_v1 = vlaneseq }
 0x109   : > { %v550_v12 = vmax.f32 %v482_v4, 0.0  ;;  %v552_v13 = vmax.f32 %v535_v5, 0.0 }
 0x10a   : > { %v1092_v14 = vpack.c.bf16 %v549_v8, %v545_v6  ;;  %v1100_v15 = vpack.c.bf16 %v551_v9, %v547_v7  ;;  %vm971_vm2 = vcmp.lt.s32.totalorder %v932_v1, 512 }
 0x10b   : > { %v1090_v16 = vpack.c.bf16 %v550_v12, %v546_v10  ;;  %v1098_v17 = vpack.c.bf16 %v552_v13, %v548_v11  ;;  %v933_v10 = vshrl.u32 %v932_v1, 7 }
 0x10d   : > { %1091 = vmatprep.subr.bf16.mxu0 %v1090_v16  ;;  %1099 = vmatprep.subr.bf16.mxu1 %v1098_v17  ;;  %v1228_v17 = vmov 1966171168  }
 0x10e   : > { %1093 = vmatpush1.bf16.msra.mxu0 %v1092_v14  ;;  %1101 = vmatpush1.bf16.msra.mxu1 %v1100_v15 }
 0x111   : > { %1073 = vmatmul.mubr.msk.f32.vlgmr.msra.gmra.mrb[8].mxu0 %vm567_vm1, %v553_v18  ;;  %1075 = vmatmul.mubr.msk.f32.vlgmr.msra.gmra.mrb[8].mxu1 %vm567_vm1, %v553_v18  ;;  %v947_v18 = vunpack.c.l.s4 %v1228_v17 }
 0x112   : > { %644 = vmatprep.mubr.f32.mxu0 %v1227_v21  ;;  %721 = vmatprep.mubr.f32.mxu1 %v1227_v21 }
 0x115   : > { %1074 = vmatmul.mubr.msk.f32.gmra.mrb[10].mxu0 %vm567_vm1, %v554_v19  ;;  %1076 = vmatmul.mubr.msk.f32.gmra.mrb[10].mxu1 %vm567_vm1, %v554_v19 }
 0x116   : > { %810 = vmatprep.mubr.f32.mxu0 %v1227_v21  ;;  %881 = vmatprep.mubr.f32.mxu1 %v1227_v21 }
 0x1e4   : > { %v640_v20 = vpop.f32.mrb[8].mxu0  ;;  %v717_v22 = vpop.f32.mrb[8].mxu1 }
 0x1e5   : > { %v642_v23 = vpop.f32.mrb[9].mxu0  ;;  %v719_v24 = vpop.f32.mrb[9].mxu1  ;;  %v641_v27 = vadd.f32 %v640_v20, %v560_v25  ;;  %v718_v28 = vadd.f32 %v717_v22, %v560_v25  ;;  %v934_v22 = vsub.s32 0, %v933_v10 }
 0x1e6   : > { %v643_v29 = vadd.f32 %v642_v23, %v560_v25  ;;  %v720_v30 = vadd.f32 %v719_v24, %v560_v25  ;;  %v930_v25 = vpop.permute.xlu0 %929 }
 0x1e7   : > { %v728_v39 = vmax.f32 %v641_v27, 0.0  ;;  %v730_v21 = vmax.f32 %v718_v28, 0.0 }
 0x1e8   : > { %v646_v31 = vpop.f32.mrb[10].mxu0  ;;  %v723_v32 = vpop.f32.mrb[10].mxu1  ;;  %v729_v42 = vmax.f32 %v643_v29, 0.0  ;;  %v731_v43 = vmax.f32 %v720_v30, 0.0  ;;  %v948_v30 = vunpack.c.0.s8 %v947_v18 }
 0x1e9   : > { %v647_v33 = vadd.f32 %v646_v31, %v565_v26  ;;  %v724_v34 = vadd.f32 %v723_v32, %v565_v26  ;;  %v648_v35 = vpop.f32.mrb[11].mxu0  ;;  %v725_v36 = vpop.f32.mrb[11].mxu1 }
 0x1ea   : > { %v649_v37 = vadd.f32 %v648_v35, %v565_v26  ;;  %v726_v38 = vadd.f32 %v725_v36, %v565_v26 }
 0x1eb   : > { %v732_v40 = vmax.f32 %v647_v33, 0.0  ;;  %v734_v41 = vmax.f32 %v724_v34, 0.0  ;;  %v935_v33 = vrot.slane %v930_v25, %v934_v22 }
 0x1ec   : > { %v733_v44 = vmax.f32 %v649_v37, 0.0  ;;  %v735_v45 = vmax.f32 %v726_v38, 0.0 }
 0x1ed   : > { %v1104_v46 = vpack.c.bf16 %v732_v40, %v728_v39  ;;  %v1108_v47 = vpack.c.bf16 %v734_v41, %v730_v21  ;;  %v951_v21 = vsub.s32 %v948_v30, %v933_v10 }
 0x1ee   : > { %v1102_v48 = vpack.c.bf16 %v733_v44, %v729_v42  ;;  %v1106_v49 = vpack.c.bf16 %v735_v45, %v731_v43 }
 0x1f0   : > { %1103 = vmatprep.subr.bf16.mxu0 %v1102_v48  ;;  %1107 = vmatprep.subr.bf16.mxu1 %v1106_v49 }
 0x1f1   : > { %1105 = vmatpush1.bf16.msra.mxu0 %v1104_v46  ;;  %1109 = vmatpush1.bf16.msra.mxu1 %v1108_v47 }
 0x1f4   : > { %1077 = vmatmul.mubr.msk.f32.vlgmr.msra.gmra.mrb[12].mxu0 %vm424_vm0, %v736_v50  ;;  %1078 = vmatmul.mubr.msk.f32.vlgmr.msra.gmra.mrb[12].mxu1 %vm424_vm0, %v736_v50 }
 0x2c7   : > { %v812_v52 = vpop.f32.mrb[12].mxu0  ;;  %v883_v53 = vpop.f32.mrb[12].mxu1 }
 0x2c8   : > { %v813_v54 = vadd.f32 %v812_v52, %v741_v51  ;;  %v884_v55 = vadd.f32 %v883_v53, %v741_v51  ;;  %v814_v56 = vpop.f32.mrb[13].mxu0  ;;  %v885_v57 = vpop.f32.mrb[13].mxu1 }
 0x2c9   : > { %v815_v58 = vadd.f32 %v814_v56, %v741_v51  ;;  %v886_v59 = vadd.f32 %v885_v57, %v741_v51 }
 0x2ca   : > { %v888_v60 = vmax.f32 %v813_v54, 0.0  ;;  %v890_v61 = vmax.f32 %v884_v55, 0.0 }
 0x2cb   : > { %v889_v63 = vmax.f32 %v815_v58, 0.0  ;;  %v891_v0 = vmax.f32 %v886_v59, 0.0 }
 0x2cc   : > { %v898_v2 = vmul.f32 %v896_v62, %v888_v60  ;;  %v900_v3 = vmul.f32 %v896_v62, %v890_v61 }
 0x2cd   : > { %v899_v4 = vmul.f32 %v896_v62, %v889_v63  ;;  %v901_v5 = vmul.f32 %v896_v62, %v891_v0 }
 0x2ce   : > { %v902_v6 = vrot.slane %v898_v2, 4  ;;  %v914_v7 = vrot.slane %v900_v3, 4 }
 0x2cf   : > { %v908_v8 = vrot.slane %v899_v4, 4  ;;  %v920_v9 = vrot.slane %v901_v5, 4 }
 0x2d0   : > { %v903_v11 = vadd.f32 %v902_v6, %v898_v2  ;;  %v915_v12 = vadd.f32 %v914_v7, %v900_v3 }
 0x2d1   : > { %v909_v13 = vadd.f32 %v908_v8, %v899_v4  ;;  %v921_v14 = vadd.f32 %v920_v9, %v901_v5 }
 0x2d2   : > { %v904_v15 = vrot.slane %v903_v11, 2  ;;  %v916_v16 = vrot.slane %v915_v12, 2 }
 0x2d3   : > { %v910_v19 = vrot.slane %v909_v13, 2  ;;  %v922_v20 = vrot.slane %v921_v14, 2 }
 0x2d4   : > { %v905_v23 = vadd.f32 %v904_v15, %v903_v11  ;;  %v917_v24 = vadd.f32 %v916_v16, %v915_v12 }
 0x2d5   : > { %v911_v26 = vadd.f32 %v910_v19, %v909_v13  ;;  %v923_v27 = vadd.f32 %v922_v20, %v921_v14 }
 0x2d6   : > { %v906_v28 = vrot.slane %v905_v23, 1  ;;  %v918_v29 = vrot.slane %v917_v24, 1 }
 0x2d7   : > { %v912_v31 = vrot.slane %v911_v26, 1  ;;  %v924_v32 = vrot.slane %v923_v27, 1 }
 0x2d8   : > { %v907_v34 = vadd.f32 %v906_v28, %v905_v23  ;;  %v919_v35 = vadd.f32 %v918_v29, %v917_v24 }
 0x2d9   : > { %v913_v36 = vadd.f32 %v912_v31, %v911_v26  ;;  %v925_v37 = vadd.f32 %v924_v32, %v923_v27 }
 0x2da   : > { %v936_v38 = vadd.f32 %v935_v33, %v907_v34  ;;  %v938_v39 = vadd.f32 %v935_v33, %v919_v35 }
 0x2db   : > { %v937_v40 = vadd.f32 %v935_v33, %v913_v36  ;;  %v939_v41 = vadd.f32 %v935_v33, %v925_v37 }
 0x2dd   : > { %v944_v42 = vcombine.low %v936_v38, %v937_v40  ;;  %v945_v43 = vcombine.low %v938_v39, %v939_v41 }
 0x2df   : > { %v952_v44 = vrot.slane %v944_v42, %v951_v21  ;;  %v959_v45 = vrot.slane %v945_v43, %v951_v21 }
 0x2e1   : > { %v960_v46 = vcombine.low %v952_v44, %v959_v45 }
 0x2e3   : > { %v967_v47 = vrot.slane %v960_v46, %v951_v21 }
 0x2e5   : > { %973 = vst.msk [vmem:[%s358_s23] sm:$0xf] %vm971_vm2, %v967_v47 }
 0x2e6   : > { %1175 = shalt.err (!%p1172_p5)
}
 0x2e7   : > { %s1176_s29 = scalar_lea.hbm %s1400_s27, 64  ;;  %s1180_s22 = scalar_lea.hbm %s1453_s9, 128 }
 0x2e8   : > { %p1177_p7 = scmp.ne.s32.totalorder %s1400_s27, %s1176_s29  ;;  %p1181_p12 = scmp.lt.u32.totalorder %s1400_s27, %s1453_s9 }
 0x2e9   : > { %p1182_p13 = scmp.lt.u32.totalorder %s1180_s22, %s1176_s29  ;;  %p1184_p1 = scmp.lt.u32.totalorder %s1176_s29, %s1400_s27 }
 0x2ea   : > { %p1178_p10 = pnand %p1177_p7, %p1321_p6 }
 0x2eb   : > { %p1183_p0 = por %p1182_p13, %p1181_p12 }
 0x2ec   : > { %p1179_p11 = pneg %p1178_p10 }
 0x2ed   : > { %p1185_p2 = por %p1184_p1, %p1183_p0 }
 0x2ef   : > { %p1186_p3 = pnand %p1185_p2, %p1179_p11 }
 0x2f1   : > { %1189 = shalt.err (!%p1186_p3)
}
 0x2f2   : > { %1110 = dma.vmem_to_hbm [thread:$0]  (%p1321_p6), %s1402_s24, 64, %s1400_s27, %s975_s28  }
 0x2f3 PF: > { %s1001_s26 = sand.u32 1, %s1212_s11   ;;  %p1113_p4 = pnand %p1056_p9, %p1325_p8 }
 0x2f4   : > { %s1002_s30 = scalar_lea.sflag [#allocation5], %s1001_s26 }
 0x2f5   : > { %1207 = dma.done.wait (!%p1113_p4), %s1002_s30, 64  }
 0x2f6   : > { %1209 = vsyncadd (!%p1113_p4), %s1002_s30, 4294967232  ;;  %p21_p5 = scmp.ge.s32.totalorder %s1306_s16, 4   ;;  %s1456_s11 = smov %s1216_s12 }
 0x2f7   : > { %s1457_s12 = smov %s1220_s13  ;;  %s1458_s13 = smov %s1319_s19 }
 0x2f8   : > { %s1459_s14 = smov %s1306_s16  ;;  %23 = sbr.rel (!%p21_p5) target bundleno = 6 (0x6), region = 119 }
 0x2ff   :  { %1007 = vsyncpa [#allocation5], 1 }
 0x300   :  { %1009 = vsyncpa [#allocation5 + $0x1], 1 }

</bundles_post_ra>
